<compile_context>
chip_gen: v6e
topology: v6e:2x2x1
jax: 0.10.0
libtpu: 0.0.40
codegen_flags: <defaults>
</compile_context>

<pallas_src>
import math

import jax
import jax.numpy as jnp
from jax.experimental import pallas as pl
from jax.experimental.pallas import tpu as pltpu


def _round_up(x, m):
    return ((x + m - 1) // m) * m


def _linear_bias_kernel(x_ref, w_ref, b_ref, o_ref):
    # x_ref: (tm, k_pad) bf16   w_ref: (k_pad, tn) bf16
    # b_ref: (1, tn) f32        o_ref: (tm, tn) out dtype
    # Single full-K MXU matmul, f32 accumulation, bias add in f32, cast store.
    o_ref[...] = (
        jnp.dot(x_ref[...], w_ref[...], preferred_element_type=jnp.float32)
        + b_ref[...]
    ).astype(o_ref.dtype)


def prepare_conv1d_lora_params(weight, bias, lora_A, lora_B, *, lora_alpha, r,
                               compute_dtype=jnp.bfloat16):
    """One-time (load-time) weight prep: cast to bf16, fold scaling*B^T as r
    extra K rows under W, zero-pad to lane-dense shapes."""
    nx, nf = weight.shape
    assert lora_A.shape == (r, nx) and lora_B.shape == (nf, r)
    scaling = lora_alpha / r
    cd = compute_dtype

    k_aug = nx + r                      # W rows + LoRA-up rows
    k_pad = _round_up(k_aug, 128)
    nf_pad = _round_up(nf, 256)         # always fill the 256-wide MXU in N

    w_aug = jnp.zeros((k_pad, nf_pad), cd)
    w_aug = w_aug.at[:nx, :nf].set(weight.astype(cd))
    w_aug = w_aug.at[nx:nx + r, :nf].set(
        (lora_B.T.astype(jnp.float32) * scaling).astype(cd))
    b_pad = jnp.zeros((1, nf_pad), jnp.float32).at[0, :nf].set(
        bias.reshape(-1).astype(jnp.float32))
    a_t = lora_A.T.astype(cd)           # (nx, r) for the per-call down-proj

    return dict(w_aug=w_aug, b_pad=b_pad, a_t=a_t,
                nx=nx, nf=nf, r=r, k_aug=k_aug, k_pad=k_pad, nf_pad=nf_pad,
                compute_dtype=cd)


def conv1d_lora(x, params, *, out_dtype=None):
    """x: (..., nx) -> (..., nf). Unmerged LoRA forward, dropout = identity."""
    nx, nf, r = params["nx"], params["nf"], params["r"]
    k_aug, k_pad, nf_pad = params["k_aug"], params["k_pad"], params["nf_pad"]
    cd = params["compute_dtype"]
    out_dtype = x.dtype if out_dtype is None else out_dtype

    orig_shape = x.shape
    x2d = x.reshape(-1, nx).astype(cd)
    M = x2d.shape[0]

    # LoRA down-projection hoisted out of the kernel; folded back in as r
    # extra K columns so the kernel does ONE matmul per output tile.
    xa = jnp.dot(x2d, params["a_t"],
                 preferred_element_type=jnp.float32).astype(cd)
    x_aug = jnp.concatenate([x2d, xa], axis=-1)          # (M, nx + r)

    # Row tile: big, clamped to the (8-aligned) padded row count.
    tm = min(256, _round_up(max(M, 1), 8))
    # Column tile: 512 when it divides nf_pad, else 256 (never 128).
    tn = 512 if nf_pad % 512 == 0 else 256

    def vmem_bytes(tm_, tn_):
        ib = jnp.dtype(cd).itemsize
        ob = jnp.dtype(out_dtype).itemsize
        return 2 * (tm_ * k_pad * ib + k_pad * tn_ * ib
                    + tn_ * 4 + tm_ * tn_ * ob)

    budget = 24 * 1024 * 1024   # stay well under the 32 MiB scoped-VMEM default
    if vmem_bytes(tm, tn) > budget and tn > 256:
        tn = 256
    if vmem_bytes(tm, tn) > budget and tm > 128:
        tm = 128

    M_pad = _round_up(max(M, 1), tm)

    if M_pad == M and k_pad == k_aug:
        xp = x_aug
    else:
        xp = jnp.zeros((M_pad, k_pad), cd).at[:M, :k_aug].set(x_aug)

    # Output-column axis outermost: each weight column tile is DMA'd once and
    # reused across every row tile.
    grid = (nf_pad // tn, M_pad // tm)

    in_bytes = jnp.dtype(cd).itemsize
    cost = pl.CostEstimate(
        flops=2 * M_pad * k_pad * nf_pad,
        transcendentals=0,
        bytes_accessed=(grid[0] * xp.size * in_bytes        # x per column tile
                        + params["w_aug"].size * in_bytes   # W streamed once
                        + params["b_pad"].size * 4
                        + M_pad * nf_pad * jnp.dtype(out_dtype).itemsize),
    )

    out2d = pl.pallas_call(
        _linear_bias_kernel,
        out_shape=jax.ShapeDtypeStruct((M_pad, nf_pad), out_dtype),
        grid_spec=pltpu.PrefetchScalarGridSpec(
            num_scalar_prefetch=0,
            grid=grid,
            in_specs=[
                pl.BlockSpec((tm, k_pad), lambda j, i: (i, 0)),   # [x, x@A^T]
                pl.BlockSpec((k_pad, tn), lambda j, i: (0, j)),   # [W; s*B^T]
                pl.BlockSpec((1, tn), lambda j, i: (0, j)),       # bias
            ],
            out_specs=pl.BlockSpec((tm, tn), lambda j, i: (i, j)),
        ),
        compiler_params=pltpu.CompilerParams(
            dimension_semantics=("parallel", "parallel")),
        cost_estimate=cost,
    )(xp, params["w_aug"], params["b_pad"])

    out = out2d if (M_pad == M and nf_pad == nf) else out2d[:M, :nf]
    return out.reshape(orig_shape[:-1] + (nf,))


def conv1d_lora_ref_bf16(x, weight, bias, lora_A, lora_B, *, lora_alpha, r,
                         compute_dtype=jnp.bfloat16):
    """Reference with the same bf16 operand rounding / f32 accumulation."""
    scaling = lora_alpha / r
    cd = compute_dtype
    nx, nf = weight.shape
    x2d = x.reshape(-1, nx).astype(cd)
    w = weight.astype(cd)
    at = lora_A.T.astype(cd)
    bt = (lora_B.T.astype(jnp.float32) * scaling).astype(cd)
    base = jnp.dot(x2d, w, preferred_element_type=jnp.float32)
    base = base + bias.astype(jnp.float32)[None, :]
    xa = jnp.dot(x2d, at, preferred_element_type=jnp.float32)
    lora = jnp.dot(xa.astype(cd), bt, preferred_element_type=jnp.float32)
    out = (base + lora).astype(x.dtype)
    return out.reshape(x.shape[:-1] + (nf,))


def conv1d_lora_ref_f32(x, weight, bias, lora_A, lora_B, *, lora_alpha, r):
    """Plain-f32 JAX reference mirroring the PyTorch forward (unmerged)."""
    scaling = lora_alpha / r
    nx, nf = weight.shape
    x2d = x.reshape(-1, nx)
    result = x2d @ weight + bias[None, :]
    result = result + (x2d @ lora_A.T @ lora_B.T) * scaling
    return result.reshape(x.shape[:-1] + (nf,))


if __name__ == "__main__":
    # Small shapes consistent with the module: (batch, seq, in_channels)
    batch, seq = 2, 8
    in_channels, out_channels = 32, 64
    r, lora_alpha = 4, 8

    key = jax.random.PRNGKey(0)
    kx, kw, ka, kb = jax.random.split(key, 4)

    x = jax.random.normal(kx, (batch, seq, in_channels), dtype=jnp.float32)

    # Parameter shapes follow Conv1D_LoRA.__init__:
    #   weight: (nx, nf) ~ N(0, 0.02), bias: zeros(nf)
    #   lora_A: (r, nx) kaiming-uniform-like, lora_B: (nf, r)
    weight = 0.02 * jax.random.normal(kw, (in_channels, out_channels),
                                      dtype=jnp.float32)
    bias = jnp.zeros((out_channels,), dtype=jnp.float32)
    bound = math.sqrt(6.0 / in_channels) / math.sqrt(1.0 + 5.0)
    lora_A = jax.random.uniform(ka, (r, in_channels), dtype=jnp.float32,
                                minval=-bound, maxval=bound)
    # Module inits lora_B to zeros; use small non-zero values so the LoRA
    # branch is actually exercised (deterministic, synthetic weights).
    lora_B = 0.01 * jax.random.normal(kb, (out_channels, r), dtype=jnp.float32)

    # One-time weight prep (load-time); per-call wrapper only touches x.
    params = prepare_conv1d_lora_params(weight, bias, lora_A, lora_B,
                                        lora_alpha=lora_alpha, r=r)

    out = conv1d_lora(x, params)
    out = jax.block_until_ready(out)

    ref_bf16 = conv1d_lora_ref_bf16(x, weight, bias, lora_A, lora_B,
                                    lora_alpha=lora_alpha, r=r)
    ref_f32 = conv1d_lora_ref_f32(x, weight, bias, lora_A, lora_B,
                                  lora_alpha=lora_alpha, r=r)

    assert out.shape == (batch, seq, out_channels)
    # Tight check vs a reference with the same bf16 operand rounding.
    assert jnp.allclose(out, ref_bf16, atol=1e-3, rtol=1e-3), \
        "mismatch vs bf16-matched reference"
    # Loose sanity check vs the pure-f32 reference (bf16 rounding budget).
    assert jnp.allclose(out, ref_f32, atol=2e-2, rtol=2e-2), \
        "mismatch vs f32 reference"
    print("KERNEL_OK")
</pallas_src>

<mosaic_0001>
module attributes {stable_mosaic.version = 11 : i64} {
  func.func @_linear_bias_kernel(%arg0: i32, %arg1: i32, %arg2: memref<16x128xbf16, #tpu.memory_space<vmem>>, %arg3: memref<128x256xbf16, #tpu.memory_space<vmem>>, %arg4: memref<1x256xf32, #tpu.memory_space<vmem>>, %arg5: memref<16x256xf32, #tpu.memory_space<vmem>>) attributes {dimension_semantics = [#tpu.dimension_semantics<parallel>, #tpu.dimension_semantics<parallel>], iteration_bounds = array<i64: 1, 1>, scalar_prefetch = 0 : i64, scratch_operands = 0 : i64, tpu.core_type = #tpu.core_type<tc>, window_params = [{transform_indices = @transform_0, window_bounds = array<i64: 16, 128>}, {transform_indices = @transform_1, window_bounds = array<i64: 128, 256>}, {transform_indices = @transform_2, window_bounds = array<i64: 1, 256>}, {transform_indices = @transform_3, window_bounds = array<i64: 16, 256>}]} {
    %c0 = arith.constant 0 : index
    %c0_0 = arith.constant 0 : index
    %0 = vector.load %arg2[%c0, %c0_0] : memref<16x128xbf16, #tpu.memory_space<vmem>>, vector<16x128xbf16>
    %c0_1 = arith.constant 0 : index
    %c0_2 = arith.constant 0 : index
    %1 = vector.load %arg3[%c0_1, %c0_2] : memref<128x256xbf16, #tpu.memory_space<vmem>>, vector<128x256xbf16>
    %cst = arith.constant dense<0.000000e+00> : vector<16x256xf32>
    %2 = tpu.matmul %0, %1, %cst {dimension_numbers = #tpu.dot_dimension_numbers<[1], [0], [0], [1], [0, 0, 1, 1], [], []>} : vector<16x128xbf16>, vector<128x256xbf16>, vector<16x256xf32> -> vector<16x256xf32>
    %c0_3 = arith.constant 0 : index
    %c0_4 = arith.constant 0 : index
    %3 = vector.load %arg4[%c0_3, %c0_4] : memref<1x256xf32, #tpu.memory_space<vmem>>, vector<1x256xf32>
    %4 = vector.broadcast %3 : vector<1x256xf32> to vector<16x256xf32>
    %5 = arith.addf %2, %4 : vector<16x256xf32>
    %c0_5 = arith.constant 0 : index
    %c0_6 = arith.constant 0 : index
    %6 = vector.load %arg5[%c0_5, %c0_6] : memref<16x256xf32, #tpu.memory_space<vmem>>, vector<16x256xf32>
    tpu.vector_store %arg5[%c0_5, %c0_6], %5 {strides = array<i32>} : memref<16x256xf32, #tpu.memory_space<vmem>>, vector<16x256xf32>,
    return
  }
  func.func @transform_0(%arg0: i32, %arg1: i32) -> (i32, i32) {
    %c0_i32 = arith.constant 0 : i32
    %c0_i32_0 = arith.constant 0 : i32
    return %arg1, %c0_i32 : i32, i32
  }
  func.func @transform_1(%arg0: i32, %arg1: i32) -> (i32, i32) {
    %c0_i32 = arith.constant 0 : i32
    %c0_i32_0 = arith.constant 0 : i32
    return %c0_i32, %arg0 : i32, i32
  }
  func.func @transform_2(%arg0: i32, %arg1: i32) -> (i32, i32) {
    %c0_i32 = arith.constant 0 : i32
    %c0_i32_0 = arith.constant 0 : i32
    return %c0_i32, %arg0 : i32, i32
  }
  func.func @transform_3(%arg0: i32, %arg1: i32) -> (i32, i32) {
    %c0_i32 = arith.constant 0 : i32
    return %arg1, %arg0 : i32, i32
  }
}

</mosaic_0001>

<bundles_post_ra>
// kernel: tpu_custom_call.1
= control target key start
LH: loop header
LB: loop body
LE: loop exit
PB: predicated region body
PF: predicated region fallthrough
CT: control target
= control target key end

     0   :  { %8 = vsyncpa [#allocation3], 0  ;;  %s385_s0 = inlined_call_operand.hbm [shape: bf16[16,128], index: 0, kind: input, shape index: {}]   ;;  %s386_s1 = inlined_call_operand.hbm [shape: bf16[128,256], index: 1, kind: input, shape index: {}]   ;;  %s387_s2 = inlined_call_operand.vmem [shape: f32[1,256], index: 2, kind: input, shape index: {}]   ;;  %s388_s3 = inlined_call_operand.hbm [shape: f32[16,256], index: 3, kind: output, shape index: {}]  }
   0x1   :  { %9 = vsyncpa [#allocation6], 0 }
   0x2   :  { %10 = vsyncpa [#allocation4], 0  ;;  %s343_s12 = smov [#allocation2]  }
   0x3   :  { %s16_s13 = sshll.u32 %s343_s12, 4  ;;  %s17_s13 = int_to_ptr.vmem [resolvable:$true] %s16_s13 }
   0x4   :  { %s285_s14 = scalar_lea.vmem %s17_s13, 128  ;;  %p290_p1 = scmp.lt.s32.totalorder %s17_s13, %s17_s13 }
   0x5   :  { %p286_p0 = scmp.ne.s32.totalorder %s17_s13, %s285_s14  ;;  %p291_p2 = scmp.lt.s32.totalorder %s285_s14, %s285_s14 }
   0x7   :  { %p292_p3 = por %p291_p2, %p290_p1 }
   0x9   :  { %p293_p4 = pnand %p292_p3, %p286_p0 }
   0xb   :  { %296 = shalt.err (!%p293_p4)
}
   0xc   :  { %s344_s15 = smov 64   ;;  %s345_s16 = smov 4  }
   0xd   :  { %22 = dma.hbm_to_vmem [thread:$0]  %s385_s0, 128, %s17_s13, [#allocation3], %s344_s15, %s344_s15, %s345_s16  }
   0xe   :  { %s346_s19 = smov [#allocation5]  }
   0xf   :  { %s28_s20 = sshll.u32 %s346_s19, 4  ;;  %s29_s20 = int_to_ptr.vmem [resolvable:$true] %s28_s20 }
  0x10   :  { %s305_s21 = scalar_lea.vmem %s29_s20, 2048  ;;  %p310_p6 = scmp.lt.s32.totalorder %s29_s20, %s29_s20 }
  0x11   :  { %p306_p5 = scmp.ne.s32.totalorder %s29_s20, %s305_s21  ;;  %p311_p7 = scmp.lt.s32.totalorder %s305_s21, %s305_s21 }
  0x13   :  { %p312_p8 = por %p311_p7, %p310_p6 }
  0x15   :  { %p313_p9 = pnand %p312_p8, %p306_p5 }
  0x17   :  { %316 = shalt.err (!%p313_p9)
}
  0x18   :  { %s347_s22 = smov 128   ;;  %s348_s23 = smov 8  }
  0x19   :  { %34 = dma.hbm_to_vmem [thread:$0]  %s386_s1, 2048, %s29_s20, [#allocation6], %s347_s22, %s347_s22, %s348_s23  }
  0x1a   :  { %337 = dma.done.wait [#allocation3], 128  }
  0x1b   :  { %338 = vsyncadd [#allocation3], 4294967168 }
  0x1c   :  { %339 = dma.done.wait [#allocation6], 2048  }
  0x1d   :  { %340 = vsyncadd [#allocation6], 4294965248  ;;  %v349_v0 = vmov 0   ;;  %v252_v1 = vld [vmem:[#allocation5 + $0x74] ss:$8 sps:$4 sm:$0xff]   ;;  %v64_v18 = vlaneseq  ;;  %s350_s26 = smov [#allocation7]  }
  0x1e   :  { %192 = vmatprep.mubr.bf16.mxu0 %v349_v0  ;;  %v254_v2 = vld [vmem:[#allocation5 + $0x70] ss:$8 sps:$4 sm:$0xff]   ;;  %160 = vmatprep.subr.bf16.mxu0 %v252_v1  ;;  %v255_v3 = vld [vmem:[#allocation5 + $0x64] ss:$8 sps:$4 sm:$0xff]   ;;  %v257_v4 = vld [vmem:[#allocation5 + $0x60] ss:$8 sps:$4 sm:$0xff]  }
  0x1f   :  { %161 = vmatpush1.bf16.msra.mxu0 %v254_v2  ;;  %v258_v5 = vld [vmem:[#allocation5 + $0x54] ss:$8 sps:$4 sm:$0xff]   ;;  %v260_v6 = vld [vmem:[#allocation5 + $0x50] ss:$8 sps:$4 sm:$0xff]   ;;  %v261_v7 = vld [vmem:[#allocation5 + $0x44] ss:$8 sps:$4 sm:$0xff]  }
  0x20   :  { %162 = vmatprep.subr.bf16.mxu0 %v255_v3  ;;  %v263_v8 = vld [vmem:[#allocation5 + $0x40] ss:$8 sps:$4 sm:$0xff]   ;;  %v264_v9 = vld [vmem:[#allocation5 + $0x34] ss:$8 sps:$4 sm:$0xff]   ;;  %v266_v10 = vld [vmem:[#allocation5 + $0x30] ss:$8 sps:$4 sm:$0xff]  }
  0x21   :  { %v267_v11 = vld [vmem:[#allocation5 + $0x24] ss:$8 sps:$4 sm:$0xff]   ;;  %v269_v12 = vld [vmem:[#allocation5 + $0x20] ss:$8 sps:$4 sm:$0xff]   ;;  %v270_v13 = vld [vmem:[#allocation5 + $0x14] ss:$8 sps:$4 sm:$0xff]  }
  0x22   :  { %v272_v14 = vld [vmem:[#allocation5 + $0x10] ss:$8 sps:$4 sm:$0xff]   ;;  %v273_v15 = vld [vmem:[#allocation5 + $0x4] ss:$8 sps:$4 sm:$0xff]   ;;  %v275_v16 = vld [vmem:[#allocation5] ss:$8 sps:$4 sm:$0xff]  }
  0x23   :  { %163 = vmatpush1.bf16.msra.mxu0 %v257_v4  ;;  %v276_v17 = vld [vmem:[#allocation2] sm:$0xff]   ;;  %v65_v19 = vshrl.u32 %v64_v18, 7  ;;  %s212_s27 = sshll.u32 %s350_s26, 4  ;;  %s213_s27 = int_to_ptr.vmem [resolvable:$true] %s212_s27 }
  0x24   :  { %164 = vmatprep.subr.bf16.mxu0 %v258_v5  ;;  %v62_v21 = vld [vmem:[%s387_s2] sm:$0x3]  ;;  %s317_s28 = scalar_lea.vmem %s213_s27, 512  ;;  %p322_p11 = scmp.lt.s32.totalorder %s213_s27, %s213_s27 }
  0x25   :  { %v66_v20 = vsub.s32 0, %v65_v19  ;;  %v70_v22 = vsub.s32 1, %v65_v19  ;;  %p318_p10 = scmp.ne.s32.totalorder %s213_s27, %s317_s28  ;;  %p323_p12 = scmp.lt.s32.totalorder %s317_s28, %s317_s28 }
  0x27   :  { %165 = vmatpush1.bf16.msra.mxu0 %v260_v6  ;;  %v67_v23 = vrot.slane %v62_v21, %v66_v20  ;;  %v71_v24 = vrot.slane %v62_v21, %v70_v22  ;;  %p324_p13 = por %p323_p12, %p322_p11 }
  0x28   :  { %166 = vmatprep.subr.bf16.mxu0 %v261_v7 }
  0x29   :  { %p325_p0 = pnand %p324_p13, %p318_p10 }
  0x2b   :  { %167 = vmatpush1.bf16.msra.mxu0 %v263_v8 }
  0x2c   :  { %168 = vmatprep.subr.bf16.mxu0 %v264_v9 }
  0x2f   :  { %169 = vmatpush1.bf16.msra.mxu0 %v266_v10 }
  0x30   :  { %170 = vmatprep.subr.bf16.mxu0 %v267_v11 }
  0x33   :  { %171 = vmatpush1.bf16.msra.mxu0 %v269_v12 }
  0x34   :  { %172 = vmatprep.subr.bf16.mxu0 %v270_v13 }
  0x37   :  { %173 = vmatpush1.bf16.msra.mxu0 %v272_v14 }
  0x38   :  { %174 = vmatprep.subr.bf16.mxu0 %v273_v15 }
  0x3b   :  { %175 = vmatpush1.bf16.msra.mxu0 %v275_v16 }
  0x3e   :  { %193 = vmatmul.mubr.bf16.vlgmr.msra.gmra.mxu0 %v276_v17 }
  0xfe   :  { %v194_v25 = vpop.f32.mrf.mxu0 }
  0xff   :  { %v195_v26 = vadd.f32 %v194_v25, %v67_v23 }
 0x100   :  { %v196_v27 = vpop.f32.mrf.mxu0 }
 0x101   :  { %203 = vst [vmem:[#allocation7] sm:$0xff] %v195_v26  ;;  %v197_v28 = vadd.f32 %v196_v27, %v71_v24 }
 0x102   :  { %v198_v29 = vpop.f32.mrf.mxu0 }
 0x103   :  { %204 = vst [vmem:[#allocation7 + $0x8] sm:$0xff] %v197_v28  ;;  %v199_v30 = vadd.f32 %v198_v29, %v67_v23 }
 0x104   :  { %v200_v31 = vpop.f32.mrf.mxu0 }
 0x105   :  { %205 = vst [vmem:[#allocation7 + $0x10] sm:$0xff] %v199_v30  ;;  %v201_v32 = vadd.f32 %v200_v31, %v71_v24 }
 0x107   :  { %206 = vst [vmem:[#allocation7 + $0x18] sm:$0xff] %v201_v32 }
 0x108   :  { %328 = shalt.err (!%p325_p0)
}
 0x109   :  { %s351_s2 = smov 256   ;;  %s352_s29 = smov 16  }
 0x10a   :  { %218 = dma.vmem_to_hbm [thread:$0]  %s213_s27, 512, %s388_s3, [#allocation4], %s351_s2, %s351_s2, %s352_s29  }
 0x10b   :  { %341 = dma.done.wait [#allocation4], 512  }
 0x10c   :  { %342 = vsyncadd [#allocation4], 4294966784 }
 0x10d   :  { %222 = vsyncpa [#allocation3], 1 }
 0x10e   :  { %223 = vsyncpa [#allocation6], 1 }
 0x10f   :  { %224 = vsyncpa [#allocation4], 1 }

</bundles_post_ra>
